<compile_context>
chip_gen: v7x
topology: tpu7x:2x2x1
jax: 0.10.0
libtpu: 0.0.40
codegen_flags: <defaults>
</compile_context>

<pallas_src>
import math
from functools import partial

import jax
import jax.numpy as jnp
from jax import lax
from jax.experimental import pallas as pl
from jax.experimental.pallas import tpu as pltpu


_LOG_2PI = math.log(2.0 * math.pi)


def _round_up(x: int, m: int) -> int:
    return (x + m - 1) // m * m


# ----------------------------------------------------------------------------
# Pallas kernel: one batch tile of the VariationalInference hot path.
# Refs (per grid step i over batch tiles of TB rows):
#   beta   : (1,)     SMEM   runtime beta
#   x      : (TB, D)  VMEM   bf16 binarized observations (upcast in-kernel)
#   mu     : (TB, L)  VMEM   posterior mean                  -> qz
#   sigma  : (TB, L)  VMEM   posterior std                   -> qz
#   z      : (TB, L)  VMEM   reparameterized latent sample
#   W_dec  : (L, D)   VMEM   decoder output projection (grid-invariant, resident)
#   b_dec  : (1, D)   VMEM   decoder bias               (grid-invariant, resident)
# Output:
#   stats  : (TB, 4)  VMEM   columns = [beta_elbo(masked), elbo, log_px, kl]
# ----------------------------------------------------------------------------
def _vi_kernel(b_total, beta_ref, x_ref, mu_ref, sigma_ref, z_ref,
               wdec_ref, bdec_ref, stats_ref):
    tb = x_ref.shape[0]

    x = x_ref[...].astype(jnp.float32)                     # (TB, D)
    z = z_ref[...]                                         # (TB, L)
    mu = mu_ref[...]
    sigma = sigma_ref[...]

    # Fused decoder output projection on the MXU (MXU slot is otherwise idle):
    # logits = z @ W_dec + b_dec  -> px = Bernoulli(logits)
    logits = jnp.dot(z, wdec_ref[...],
                     preferred_element_type=jnp.float32) + bdec_ref[...]

    # Bernoulli(logits).log_prob(x) = x * logits - softplus(logits)
    # (single stable softplus per element; keep transcendental count minimal).
    log_px_el = x * logits - jnp.logaddexp(jnp.float32(0.0), logits)
    log_px = jnp.sum(log_px_el, axis=1, keepdims=True)     # (TB, 1)

    half_log_2pi = jnp.float32(0.5 * _LOG_2PI)
    # pz = N(0, 1):  log_prob(z) = -0.5*z^2 - 0.5*log(2*pi)
    log_pz = jnp.sum(-0.5 * (z * z) - half_log_2pi, axis=1, keepdims=True)
    # qz = N(mu, sigma): log_prob(z) = -0.5*((z-mu)/sigma)^2 - log(sigma) - 0.5*log(2*pi)
    zn = (z - mu) / sigma
    log_qz = jnp.sum(-0.5 * (zn * zn) - jnp.log(sigma) - half_log_2pi,
                     axis=1, keepdims=True)

    kl = log_qz - log_pz
    elbo = log_px - kl
    beta = beta_ref[0]                                     # runtime SMEM scalar
    beta_elbo = log_px - beta * kl

    # Mask padded rows out of the loss partials (only the last tile can have them).
    row = pl.program_id(0) * tb + lax.broadcasted_iota(jnp.int32, (tb, 1), 0)
    beta_elbo = jnp.where(row < b_total, beta_elbo, jnp.float32(0.0))

    # Pack all per-row stats into one (TB, 4) tile: single small writeback.
    lane = lax.broadcasted_iota(jnp.int32, (tb, 4), 1)
    stats = jnp.where(lane == 0, beta_elbo,
            jnp.where(lane == 1, elbo,
            jnp.where(lane == 2, log_px, kl)))
    stats_ref[...] = stats


def variational_inference(x_flat, mu, sigma, z, w_dec, b_dec, beta=1.0,
                          *, vmem_budget_bytes=8 * 1024 * 1024):
    """VariationalInference.forward hot path (decoder projection fused) in Pallas."""
    B, D = x_flat.shape
    L = mu.shape[1]
    assert mu.shape == (B, L) and sigma.shape == (B, L) and z.shape == (B, L)
    assert w_dec.shape == (L, D) and b_dec.shape == (D,)

    # ---- batch tile size: multiple of 8 rows; double-buffered input streams
    #      kept within a conservative VMEM budget (pipelines on v5e/v6e/v7x).
    bytes_per_row = D * 2 + 3 * L * 4 + 4 * 4   # bf16 x + f32 mu/sigma/z + stats
    tb = vmem_budget_bytes // (2 * max(bytes_per_row, 1))
    tb = max(8, min(512, int(tb), _round_up(B, 8)))
    tb -= tb % 8
    b_pad = _round_up(B, tb)
    pad = b_pad - B

    # x is binarized (Bernoulli likelihood) -> exact in bf16; halves HBM bytes.
    x_b = x_flat.astype(jnp.bfloat16)
    mu = mu.astype(jnp.float32)
    sigma = sigma.astype(jnp.float32)
    z = z.astype(jnp.float32)
    if pad:
        x_b = jnp.pad(x_b, ((0, pad), (0, 0)))
        mu = jnp.pad(mu, ((0, pad), (0, 0)))
        sigma = jnp.pad(sigma, ((0, pad), (0, 0)), constant_values=1.0)
        z = jnp.pad(z, ((0, pad), (0, 0)))

    beta_arr = jnp.asarray([beta], dtype=jnp.float32)      # runtime scalar -> SMEM
    w_dec = w_dec.astype(jnp.float32)
    b_dec2 = b_dec.reshape(1, D).astype(jnp.float32)

    grid = (b_pad // tb,)
    stats = pl.pallas_call(
        partial(_vi_kernel, B),
        grid=grid,
        in_specs=[
            pl.BlockSpec(memory_space=pltpu.MemorySpace.SMEM),   # beta (1,)
            pl.BlockSpec((tb, D), lambda i: (i, 0)),             # x     (bf16)
            pl.BlockSpec((tb, L), lambda i: (i, 0)),             # mu
            pl.BlockSpec((tb, L), lambda i: (i, 0)),             # sigma
            pl.BlockSpec((tb, L), lambda i: (i, 0)),             # z
            pl.BlockSpec((L, D), lambda i: (0, 0)),              # W_dec (resident)
            pl.BlockSpec((1, D), lambda i: (0, 0)),              # b_dec (resident)
        ],
        out_specs=pl.BlockSpec((tb, 4), lambda i: (i, 0)),
        out_shape=jax.ShapeDtypeStruct((b_pad, 4), jnp.float32),
        compiler_params=pltpu.CompilerParams(
            dimension_semantics=("parallel",),
            vmem_limit_bytes=32 * 1024 * 1024,
        ),
    )(beta_arr, x_b, mu, sigma, z, w_dec, b_dec2)

    # Finish the batch mean outside the kernel (keeps the grid axis parallel;
    # padded rows already contribute 0 to column 0).
    loss = -jnp.sum(stats[:, 0]) / jnp.float32(B)
    diagnostics = {
        "elbo": stats[:B, 1],
        "log_px": stats[:B, 2],
        "kl": stats[:B, 3],
    }
    return loss, diagnostics


# ----------------------------------------------------------------------------
# Plain-JAX "model" glue: encoder + reparameterization (qz = N(mu, sigma),
# pz = N(0, 1)); the decoder's output projection (px logits) is fused into
# the Pallas kernel above. Deterministic parameter init in-script.
# ----------------------------------------------------------------------------
def vae_encode(params, x_flat, eps):
    h = x_flat @ params["W_enc"] + params["b_enc"]          # (B, 2L)
    mu, log_sigma = jnp.split(h, 2, axis=1)
    sigma = jnp.exp(log_sigma)
    z = mu + sigma * eps                                    # reparameterization
    return mu, sigma, z


if __name__ == "__main__":
    B, C, H, W = 2, 4, 16, 16
    L = 32
    D = C * H * W

    key = jax.random.PRNGKey(0)
    k_x, k_we, k_wd, k_eps = jax.random.split(key, 4)

    # Binarized observations (Bernoulli likelihood).
    x = jax.random.bernoulli(k_x, 0.5, (B, C, H, W)).astype(jnp.float32)
    x_flat = x.reshape(B, -1)                               # (B, D)

    params = {
        "W_enc": 0.02 * jax.random.normal(k_we, (D, 2 * L), jnp.float32),
        "b_enc": jnp.zeros((2 * L,), jnp.float32),
        "W_dec": 0.02 * jax.random.normal(k_wd, (L, D), jnp.float32),
        "b_dec": jnp.zeros((D,), jnp.float32),
    }
    eps = jax.random.normal(k_eps, (B, L), jnp.float32)

    mu, sigma, z = vae_encode(params, x_flat, eps)

    beta = 1.0
    loss, diag = variational_inference(
        x_flat, mu, sigma, z, params["W_dec"], params["b_dec"], beta=beta)
    loss = jax.block_until_ready(loss)
    jax.block_until_ready(diag["elbo"])

    # Pure-JAX reference for correctness.
    logits_ref = jnp.dot(z, params["W_dec"],
                         precision=jax.lax.Precision.HIGHEST,
                         preferred_element_type=jnp.float32) + params["b_dec"]
    log2pi = math.log(2.0 * math.pi)
    log_px_ref = jnp.sum(
        x_flat * logits_ref - jnp.logaddexp(0.0, logits_ref), axis=1)
    log_pz_ref = jnp.sum(-0.5 * z ** 2 - 0.5 * log2pi, axis=1)
    log_qz_ref = jnp.sum(
        -0.5 * ((z - mu) / sigma) ** 2 - jnp.log(sigma) - 0.5 * log2pi, axis=1)
    kl_ref = log_qz_ref - log_pz_ref
    elbo_ref = log_px_ref - kl_ref
    loss_ref = -jnp.mean(log_px_ref - beta * kl_ref)

    # kl has no matmul -> tight; log_px/elbo/loss include the fused MXU matmul
    # (small precision difference vs the XLA reference matmul) -> looser.
    assert jnp.allclose(diag["kl"], kl_ref, rtol=1e-4, atol=1e-4)
    assert jnp.allclose(diag["log_px"], log_px_ref, rtol=1e-3, atol=1e-2)
    assert jnp.allclose(diag["elbo"], elbo_ref, rtol=1e-3, atol=1e-2)
    assert jnp.allclose(loss, loss_ref, rtol=1e-3, atol=1e-2)

    print("KERNEL_OK")
</pallas_src>

<mosaic_0001>
module attributes {stable_mosaic.version = 11 : i64} {
  func.func @_vi_kernel(%arg0: i32, %arg1: memref<1xf32, #tpu.memory_space<smem>>, %arg2: memref<8x1024xbf16, #tpu.memory_space<vmem>>, %arg3: memref<8x32xf32, #tpu.memory_space<vmem>>, %arg4: memref<8x32xf32, #tpu.memory_space<vmem>>, %arg5: memref<8x32xf32, #tpu.memory_space<vmem>>, %arg6: memref<32x1024xf32, #tpu.memory_space<vmem>>, %arg7: memref<1x1024xf32, #tpu.memory_space<vmem>>, %arg8: memref<8x4xf32, #tpu.memory_space<vmem>>) attributes {dimension_semantics = [#tpu.dimension_semantics<parallel>], iteration_bounds = array<i64: 1>, scalar_prefetch = 0 : i64, scratch_operands = 0 : i64, tpu.core_type = #tpu.core_type<tc>, window_params = [{transform_indices = @transform_0, window_bounds = array<i64: 1>}, {transform_indices = @transform_1, window_bounds = array<i64: 8, 1024>}, {transform_indices = @transform_2, window_bounds = array<i64: 8, 32>}, {transform_indices = @transform_3, window_bounds = array<i64: 8, 32>}, {transform_indices = @transform_4, window_bounds = array<i64: 8, 32>}, {pipeline_mode = #tpu.pipeline_mode<synchronous>, transform_indices = @transform_5, window_bounds = array<i64: 32, 1024>}, {pipeline_mode = #tpu.pipeline_mode<synchronous>, transform_indices = @transform_6, window_bounds = array<i64: 1, 1024>}, {transform_indices = @transform_7, window_bounds = array<i64: 8, 4>}]} {
    %c0 = arith.constant 0 : index
    %c0_0 = arith.constant 0 : index
    %0 = vector.load %arg2[%c0, %c0_0] : memref<8x1024xbf16, #tpu.memory_space<vmem>>, vector<8x1024xbf16>
    %1 = arith.extf %0 : vector<8x1024xbf16> to vector<8x1024xf32>
    %c0_1 = arith.constant 0 : index
    %c0_2 = arith.constant 0 : index
    %2 = vector.load %arg5[%c0_1, %c0_2] : memref<8x32xf32, #tpu.memory_space<vmem>>, vector<8x32xf32>
    %c0_3 = arith.constant 0 : index
    %c0_4 = arith.constant 0 : index
    %3 = vector.load %arg3[%c0_3, %c0_4] : memref<8x32xf32, #tpu.memory_space<vmem>>, vector<8x32xf32>
    %c0_5 = arith.constant 0 : index
    %c0_6 = arith.constant 0 : index
    %4 = vector.load %arg4[%c0_5, %c0_6] : memref<8x32xf32, #tpu.memory_space<vmem>>, vector<8x32xf32>
    %c0_7 = arith.constant 0 : index
    %c0_8 = arith.constant 0 : index
    %5 = vector.load %arg6[%c0_7, %c0_8] : memref<32x1024xf32, #tpu.memory_space<vmem>>, vector<32x1024xf32>
    %cst = arith.constant dense<0.000000e+00> : vector<8x1024xf32>
    %6 = tpu.matmul %2, %5, %cst {dimension_numbers = #tpu.dot_dimension_numbers<[1], [0], [0], [1], [0, 0, 1, 1], [], []>} : vector<8x32xf32>, vector<32x1024xf32>, vector<8x1024xf32> -> vector<8x1024xf32>
    %c0_9 = arith.constant 0 : index
    %c0_10 = arith.constant 0 : index
    %7 = vector.load %arg7[%c0_9, %c0_10] : memref<1x1024xf32, #tpu.memory_space<vmem>>, vector<1x1024xf32>
    %8 = vector.broadcast %7 : vector<1x1024xf32> to vector<8x1024xf32>
    %9 = arith.addf %6, %8 : vector<8x1024xf32>
    %10 = arith.mulf %1, %9 : vector<8x1024xf32>
    %cst_11 = arith.constant 0.000000e+00 : f32
    %11 = vector.broadcast %cst_11 : f32 to vector<8x1024xf32>
    %12 = arith.maximumf %11, %9 : vector<8x1024xf32>
    %13 = vector.broadcast %cst_11 : f32 to vector<8x1024xf32>
    %14 = arith.subf %13, %9 : vector<8x1024xf32>
    %15 = arith.cmpf one, %14, %14 : vector<8x1024xf32>
    %16 = vector.broadcast %cst_11 : f32 to vector<8x1024xf32>
    %17 = arith.addf %16, %9 : vector<8x1024xf32>
    %18 = math.absf %14 : vector<8x1024xf32>
    %cst_12 = arith.constant 0.000000e+00 : f32
    %19 = vector.broadcast %cst_12 : f32 to vector<8x1024xf32>
    %20 = arith.subf %19, %18 : vector<8x1024xf32>
    %21 = math.exp %20 : vector<8x1024xf32>
    %22 = math.log1p %21 : vector<8x1024xf32>
    %23 = arith.addf %12, %22 : vector<8x1024xf32>
    %24 = arith.select %15, %17, %23 : vector<8x1024xi1>, vector<8x1024xf32>
    %25 = arith.subf %10, %24 : vector<8x1024xf32>
    %cst_13 = arith.constant dense<0.000000e+00> : vector<8xf32>
    %26 = vector.multi_reduction <add>, %25, %cst_13 [1] : vector<8x1024xf32> to vector<8xf32>
    %27 = vector.shape_cast %26 : vector<8xf32> to vector<8x1xf32>
    %28 = arith.mulf %2, %2 : vector<8x32xf32>
    %cst_14 = arith.constant -5.000000e-01 : f32
    %29 = vector.broadcast %cst_14 : f32 to vector<8x32xf32>
    %30 = arith.mulf %29, %28 : vector<8x32xf32>
    %cst_15 = arith.constant 0.918938517 : f32
    %31 = vector.broadcast %cst_15 : f32 to vector<8x32xf32>
    %32 = arith.subf %30, %31 : vector<8x32xf32>
    %cst_16 = arith.constant dense<0.000000e+00> : vector<8xf32>
    %33 = vector.multi_reduction <add>, %32, %cst_16 [1] : vector<8x32xf32> to vector<8xf32>
    %34 = vector.shape_cast %33 : vector<8xf32> to vector<8x1xf32>
    %35 = arith.subf %2, %3 : vector<8x32xf32>
    %36 = arith.divf %35, %4 : vector<8x32xf32>
    %37 = arith.mulf %36, %36 : vector<8x32xf32>
    %cst_17 = arith.constant -5.000000e-01 : f32
    %38 = vector.broadcast %cst_17 : f32 to vector<8x32xf32>
    %39 = arith.mulf %38, %37 : vector<8x32xf32>
    %40 = math.log %4 : vector<8x32xf32>
    %41 = arith.subf %39, %40 : vector<8x32xf32>
    %cst_18 = arith.constant 0.918938517 : f32
    %42 = vector.broadcast %cst_18 : f32 to vector<8x32xf32>
    %43 = arith.subf %41, %42 : vector<8x32xf32>
    %cst_19 = arith.constant dense<0.000000e+00> : vector<8xf32>
    %44 = vector.multi_reduction <add>, %43, %cst_19 [1] : vector<8x32xf32> to vector<8xf32>
    %45 = vector.shape_cast %44 : vector<8xf32> to vector<8x1xf32>
    %46 = arith.subf %45, %34 : vector<8x1xf32>
    %47 = arith.subf %27, %46 : vector<8x1xf32>
    %c0_20 = arith.constant 0 : index
    %48 = memref.load %arg1[%c0_20] : memref<1xf32, #tpu.memory_space<smem>>
    %49 = vector.broadcast %48 : f32 to vector<8x1xf32>
    %50 = arith.mulf %49, %46 : vector<8x1xf32>
    %51 = arith.subf %27, %50 : vector<8x1xf32>
    %c8_i32 = arith.constant 8 : i32
    %52 = arith.muli %arg0, %c8_i32 : i32
    %53 = tpu.iota {dimensions = array<i32: 0>} : vector<8x1xi32>
    %54 = vector.broadcast %52 : i32 to vector<8x1xi32>
    %55 = arith.addi %54, %53 : vector<8x1xi32>
    %c2_i32 = arith.constant 2 : i32
    %56 = vector.broadcast %c2_i32 : i32 to vector<8x1xi32>
    %57 = arith.cmpi slt, %55, %56 : vector<8x1xi32>
    %cst_21 = arith.constant 0.000000e+00 : f32
    %58 = vector.broadcast %cst_21 : f32 to vector<8x1xf32>
    %59 = arith.select %57, %51, %58 : vector<8x1xi1>, vector<8x1xf32>
    %60 = tpu.iota {dimensions = array<i32: 1>} : vector<8x4xi32>
    %c0_i32 = arith.constant 0 : i32
    %61 = vector.broadcast %c0_i32 : i32 to vector<8x4xi32>
    %62 = arith.cmpi eq, %60, %61 : vector<8x4xi32>
    %c1_i32 = arith.constant 1 : i32
    %63 = vector.broadcast %c1_i32 : i32 to vector<8x4xi32>
    %64 = arith.cmpi eq, %60, %63 : vector<8x4xi32>
    %c2_i32_22 = arith.constant 2 : i32
    %65 = vector.broadcast %c2_i32_22 : i32 to vector<8x4xi32>
    %66 = arith.cmpi eq, %60, %65 : vector<8x4xi32>
    %67 = vector.shape_cast %27 : vector<8x1xf32> to vector<8x1xf32>
    %68 = vector.broadcast %67 : vector<8x1xf32> to vector<8x4xf32>
    %69 = vector.shape_cast %46 : vector<8x1xf32> to vector<8x1xf32>
    %70 = vector.broadcast %69 : vector<8x1xf32> to vector<8x4xf32>
    %71 = arith.select %66, %68, %70 : vector<8x4xi1>, vector<8x4xf32>
    %72 = vector.shape_cast %47 : vector<8x1xf32> to vector<8x1xf32>
    %73 = vector.broadcast %72 : vector<8x1xf32> to vector<8x4xf32>
    %74 = arith.select %64, %73, %71 : vector<8x4xi1>, vector<8x4xf32>
    %75 = vector.shape_cast %59 : vector<8x1xf32> to vector<8x1xf32>
    %76 = vector.broadcast %75 : vector<8x1xf32> to vector<8x4xf32>
    %77 = arith.select %62, %76, %74 : vector<8x4xi1>, vector<8x4xf32>
    %c0_23 = arith.constant 0 : index
    %c0_24 = arith.constant 0 : index
    %78 = vector.load %arg8[%c0_23, %c0_24] : memref<8x4xf32, #tpu.memory_space<vmem>>, vector<8x4xf32>
    tpu.vector_store %arg8[%c0_23, %c0_24], %77 {strides = array<i32>} : memref<8x4xf32, #tpu.memory_space<vmem>>, vector<8x4xf32>,
    return
  }
  func.func @transform_0(%arg0: i32) -> i32 {
    %c0_i32 = arith.constant 0 : i32
    %c0_i32_0 = arith.constant 0 : i32
    return %c0_i32 : i32
  }
  func.func @transform_1(%arg0: i32) -> (i32, i32) {
    %c0_i32 = arith.constant 0 : i32
    %c0_i32_0 = arith.constant 0 : i32
    return %arg0, %c0_i32 : i32, i32
  }
  func.func @transform_2(%arg0: i32) -> (i32, i32) {
    %c0_i32 = arith.constant 0 : i32
    %c0_i32_0 = arith.constant 0 : i32
    return %arg0, %c0_i32 : i32, i32
  }
  func.func @transform_3(%arg0: i32) -> (i32, i32) {
    %c0_i32 = arith.constant 0 : i32
    %c0_i32_0 = arith.constant 0 : i32
    return %arg0, %c0_i32 : i32, i32
  }
  func.func @transform_4(%arg0: i32) -> (i32, i32) {
    %c0_i32 = arith.constant 0 : i32
    %c0_i32_0 = arith.constant 0 : i32
    return %arg0, %c0_i32 : i32, i32
  }
  func.func @transform_5(%arg0: i32) -> (i32, i32) {
    %c0_i32 = arith.constant 0 : i32
    %c0_i32_0 = arith.constant 0 : i32
    %c0_i32_1 = arith.constant 0 : i32
    return %c0_i32, %c0_i32_0 : i32, i32
  }
  func.func @transform_6(%arg0: i32) -> (i32, i32) {
    %c0_i32 = arith.constant 0 : i32
    %c0_i32_0 = arith.constant 0 : i32
    %c0_i32_1 = arith.constant 0 : i32
    return %c0_i32, %c0_i32_0 : i32, i32
  }
  func.func @transform_7(%arg0: i32) -> (i32, i32) {
    %c0_i32 = arith.constant 0 : i32
    %c0_i32_0 = arith.constant 0 : i32
    return %arg0, %c0_i32 : i32, i32
  }
}

</mosaic_0001>

<bundles_post_ra>
// kernel: tpu_custom_call.1
= control target key start
LH: loop header
LB: loop body
LE: loop exit
PB: predicated region body
PF: predicated region fallthrough
CT: control target
= control target key end

     0   :  { %13 = vsyncpa [#allocation4], 0  ;;  %s1181_s0 = inlined_call_operand.<no memory space> [shape: f32[1], index: 0, kind: input, shape index: {}]   ;;  %s1182_s1 = inlined_call_operand.hbm [shape: bf16[8,1024], index: 1, kind: input, shape index: {}]   ;;  %s1183_s2 = inlined_call_operand.hbm [shape: f32[8,32], index: 2, kind: input, shape index: {}]   ;;  %s1184_s3 = inlined_call_operand.vmem [shape: f32[8,32], index: 3, kind: input, shape index: {}]   ;;  %s1185_s4 = inlined_call_operand.hbm [shape: f32[8,32], index: 4, kind: input, shape index: {}]   ;;  %s1186_s5 = inlined_call_operand.hbm [shape: f32[32,1024], index: 5, kind: input, shape index: {}]   ;;  %s1187_s6 = inlined_call_operand.vmem [shape: f32[1,1024], index: 6, kind: input, shape index: {}]   ;;  %s1188_s7 = inlined_call_operand.vmem [shape: f32[8,4], index: 7, kind: output, shape index: {}]  }
   0x1   :  { %14 = vsyncpa [#allocation6], 0 }
   0x2   :  { %15 = vsyncpa [#allocation9], 0  ;;  %s853_s24 = smov [#allocation5]   ;;  %s854_s26 = smov [#allocation3]  }
   0x3   :  { %s34_s25 = sshll.u32 %s853_s24, 4  ;;  %s24_s27 = sshll.u32 %s854_s26, 4  ;;  %s35_s25 = int_to_ptr.vmem [resolvable:$true] %s34_s25  ;;  %s25_s27 = int_to_ptr.vmem [resolvable:$true] %s24_s27 }
   0x4   :  { %s759_s30 = scalar_lea.hbm %s1183_s2, 128 }
   0x5   :  { %p760_p0 = scmp.ne.s32.totalorder %s1183_s2, %s759_s30  ;;  %p763_p1 = scmp.lt.u32.totalorder %s759_s30, %s1183_s2 }
   0x7   :  { %p765_p2 = pnand %p763_p1, %p760_p0 }
   0x9   :  { %768 = shalt.err (!%p765_p2)
}
   0xa   :  { %s769_s12 = scalar_lea.vmem %s35_s25, 128  ;;  %p774_p4 = scmp.lt.s32.totalorder %s35_s25, %s35_s25 }
   0xb   :  { %p770_p3 = scmp.ne.s32.totalorder %s35_s25, %s769_s12  ;;  %p775_p5 = scmp.lt.s32.totalorder %s769_s12, %s769_s12 }
   0xd   :  { %p776_p6 = por %p775_p5, %p774_p4 }
   0xf   :  { %p777_p7 = pnand %p776_p6, %p770_p3 }
  0x11   :  { %780 = shalt.err (!%p777_p7)
}
  0x12   :  { %37 = dma.hbm_to_vmem [thread:$0]  %s1183_s2, 128, %s35_s25, [#allocation6]  }
  0x13   :  { %s781_s17 = scalar_lea.hbm %s1182_s1, 512 }
  0x14   :  { %p782_p8 = scmp.ne.s32.totalorder %s1182_s1, %s781_s17  ;;  %p785_p9 = scmp.lt.u32.totalorder %s781_s17, %s1182_s1 }
  0x16   :  { %p787_p10 = pnand %p785_p9, %p782_p8 }
  0x18   :  { %790 = shalt.err (!%p787_p10)
}
  0x19   :  { %s791_s22 = scalar_lea.vmem %s25_s27, 512  ;;  %p796_p12 = scmp.lt.s32.totalorder %s25_s27, %s25_s27 }
  0x1a   :  { %p792_p11 = scmp.ne.s32.totalorder %s25_s27, %s791_s22  ;;  %p797_p13 = scmp.lt.s32.totalorder %s791_s22, %s791_s22 }
  0x1c   :  { %p798_p0 = por %p797_p13, %p796_p12 }
  0x1e   :  { %p799_p1 = pnand %p798_p0, %p792_p11 }
  0x20   :  { %802 = shalt.err (!%p799_p1)
}
  0x21   :  { %27 = dma.hbm_to_vmem [thread:$0]  %s1182_s1, 512, %s25_s27, [#allocation4]  }
  0x22   :  { %s855_s24 = smov [#allocation7]   ;;  %s856_s26 = smov [#allocation8]  }
  0x23   :  { %s46_s25 = sshll.u32 %s855_s24, 4  ;;  %s55_s28 = sshll.u32 %s856_s26, 4  ;;  %s47_s25 = int_to_ptr.vmem [resolvable:$true] %s46_s25  ;;  %s924_s28 = int_to_ptr.vmem [resolvable:$true] %s55_s28 }
  0x24   :  { %s803_s8 = scalar_lea.hbm %s1185_s4, 128 }
  0x25   :  { %p804_p2 = scmp.ne.s32.totalorder %s1185_s4, %s803_s8  ;;  %p807_p3 = scmp.lt.u32.totalorder %s803_s8, %s1185_s4 }
  0x27   :  { %p809_p4 = pnand %p807_p3, %p804_p2 }
  0x29   :  { %812 = shalt.err (!%p809_p4)
}
  0x2a   :  { %s813_s1 = scalar_lea.vmem %s47_s25, 128  ;;  %p818_p6 = scmp.lt.s32.totalorder %s47_s25, %s47_s25 }
  0x2b   :  { %p814_p5 = scmp.ne.s32.totalorder %s47_s25, %s813_s1  ;;  %p819_p7 = scmp.lt.s32.totalorder %s813_s1, %s813_s1 }
  0x2d   :  { %p820_p8 = por %p819_p7, %p818_p6 }
  0x2f   :  { %p821_p9 = pnand %p820_p8, %p814_p5 }
  0x31   :  { %824 = shalt.err (!%p821_p9)
}
  0x32   :  { %49 = dma.hbm_to_vmem [thread:$0]  %s1185_s4, 128, %s47_s25, [#allocation6]  }
  0x33   :  { %s825_s16 = scalar_lea.hbm %s1186_s5, 4096 }
  0x34   :  { %p826_p10 = scmp.ne.s32.totalorder %s1186_s5, %s825_s16  ;;  %p829_p11 = scmp.lt.u32.totalorder %s825_s16, %s1186_s5 }
  0x36   :  { %p831_p12 = pnand %p829_p11, %p826_p10 }
  0x38   :  { %834 = shalt.err (!%p831_p12)
}
  0x39   :  { %s835_s21 = scalar_lea.vmem %s924_s28, 4096  ;;  %p840_p0 = scmp.lt.s32.totalorder %s924_s28, %s924_s28 }
  0x3a   :  { %p836_p13 = scmp.ne.s32.totalorder %s924_s28, %s835_s21  ;;  %p841_p1 = scmp.lt.s32.totalorder %s835_s21, %s835_s21 }
  0x3c   :  { %p842_p2 = por %p841_p1, %p840_p0 }
  0x3e   :  { %p843_p3 = pnand %p842_p2, %p836_p13 }
  0x40   :  { %846 = shalt.err (!%p843_p3)
}
  0x41   :  { %s857_s4 = smov 1024   ;;  %s858_s22 = smov 64  }
  0x42   :  { %61 = dma.hbm_to_vmem [thread:$0]  %s1186_s5, 4096, %s924_s28, [#allocation9], %s857_s4, %s857_s4, %s858_s22  }
  0x43   :  { %847 = dma.done.wait [#allocation4], 512  }
  0x44   :  { %848 = vsyncadd [#allocation4], 4294966784 }
  0x45   :  { %849 = dma.done.wait [#allocation6], 256  }
  0x46   :  { %850 = vsyncadd [#allocation6], 4294967040 }
  0x47   :  { %851 = dma.done.wait [#allocation9], 4096  }
  0x48   :  { %852 = vsyncadd [#allocation9], 4294963200  ;;  %v859_v0 = vmov 0.0   ;;  %v92_v1 = vld [vmem:[#allocation8 + $0x8] sm:$0xff]  ;;  %v94_v3 = vld [vmem:[#allocation8 + $0x18] sm:$0xff]  ;;  %vm165_vm0 = vcmask 261120  }
  0x49   :  { %233 = vmatprep.mubr.f32.mxu0 %v859_v0  ;;  %304 = vmatprep.mubr.f32.mxu1 %v859_v0  ;;  %v100_v2 = vld [vmem:[#allocation8 + $0x48] sm:$0xff]  ;;  %v102_v5 = vld [vmem:[#allocation8 + $0x58] sm:$0xff]  ;;  %v91_v6 = vld [vmem:[#allocation8] sm:$0xff] }
  0x4a   :  { %v684_v4 = vpack.c.bf16 %v100_v2, %v92_v1  ;;  %v99_v7 = vld [vmem:[#allocation8 + $0x40] sm:$0xff]  ;;  %v692_v8 = vpack.c.bf16 %v102_v5, %v94_v3  ;;  %v93_v10 = vld [vmem:[#allocation8 + $0x10] sm:$0xff]  ;;  %v108_v12 = vld [vmem:[#allocation8 + $0x88] sm:$0xff]  ;;  %v125_v2 = vlaneseq }
  0x4b   :  { %v686_v9 = vpack.c.bf16 %v99_v7, %v91_v6  ;;  %v101_v11 = vld [vmem:[#allocation8 + $0x50] sm:$0xff]  ;;  %v116_v14 = vld [vmem:[#allocation8 + $0xc8] sm:$0xff]  ;;  %v110_v15 = vld [vmem:[#allocation8 + $0x98] sm:$0xff] }
  0x4c   :  { %685 = vmatprep.subr.bf16.mxu0 %v684_v4  ;;  %v694_v13 = vpack.c.bf16 %v101_v11, %v93_v10  ;;  %v118_v16 = vld [vmem:[#allocation8 + $0xd8] sm:$0xff]  ;;  %693 = vmatprep.subr.bf16.mxu1 %v692_v8  ;;  %v688_v17 = vpack.c.bf16 %v116_v14, %v108_v12  ;;  %v107_v19 = vld [vmem:[#allocation8 + $0x80] sm:$0xff]  ;;  %v109_v21 = vld [vmem:[#allocation8 + $0x90] sm:$0xff]  ;;  %v969_v3 = vshrl.u32 %v125_v2, 7 }
  0x4d   :  { %687 = vmatpush1.bf16.msra.mxu0 %v686_v9  ;;  %v696_v18 = vpack.c.bf16 %v118_v16, %v110_v15  ;;  %v115_v20 = vld [vmem:[#allocation8 + $0xc0] sm:$0xff]  ;;  %v117_v23 = vld [vmem:[#allocation8 + $0xd0] sm:$0xff]  ;;  %v96_v24 = vld [vmem:[#allocation8 + $0x28] sm:$0xff] }
  0x4e   :  { %695 = vmatpush1.bf16.msra.mxu1 %v694_v13  ;;  %v690_v22 = vpack.c.bf16 %v115_v20, %v107_v19  ;;  %689 = vmatprep.subr.bf16.mxu0 %v688_v17  ;;  %v698_v25 = vpack.c.bf16 %v117_v23, %v109_v21  ;;  %v88_v26 = vld [vmem:[#allocation7] sm:$0xff]  ;;  %v104_v27 = vld [vmem:[#allocation8 + $0x68] sm:$0xff]  ;;  %v95_v32 = vld [vmem:[#allocation8 + $0x20] sm:$0xff]  ;;  %v127_v4 = vsub.s32 0, %v969_v3  ;;  %v135_v6 = vsub.s32 2, %v969_v3 }
  0x4f   :  { %697 = vmatprep.subr.bf16.mxu1 %v696_v18  ;;  %v98_v28 = vld [vmem:[#allocation8 + $0x38] sm:$0xff]  ;;  %v700_v30 = vpack.c.bf16 %v104_v27, %v96_v24  ;;  %v103_v33 = vld [vmem:[#allocation8 + $0x60] sm:$0xff]  ;;  %v97_v34 = vld [vmem:[#allocation8 + $0x30] sm:$0xff]  ;;  %v630_v54 = vmul.f32 %v88_v26, %v88_v26  ;;  %v131_v7 = vsub.s32 1, %v969_v3  ;;  %v139_v8 = vsub.s32 3, %v969_v3 }
  0x50   :  { %v106_v29 = vld [vmem:[#allocation8 + $0x78] sm:$0xff]  ;;  %v702_v35 = vpack.c.bf16 %v103_v33, %v95_v32  ;;  %v105_v36 = vld [vmem:[#allocation8 + $0x70] sm:$0xff]  ;;  %v112_v37 = vld [vmem:[#allocation8 + $0xa8] sm:$0xff]  ;;  %v143_v20 = vsub.s32 4, %v969_v3  ;;  %v151_v21 = vsub.s32 6, %v969_v3  ;;  %v147_v24 = vsub.s32 5, %v969_v3 }
  0x51   :  { %v708_v31 = vpack.c.bf16 %v106_v29, %v98_v28  ;;  %691 = vmatpush1.bf16.msra.mxu0 %v690_v22  ;;  %v120_v38 = vld [vmem:[#allocation8 + $0xe8] sm:$0xff]  ;;  %v710_v39 = vpack.c.bf16 %v105_v36, %v97_v34  ;;  %v114_v41 = vld [vmem:[#allocation8 + $0xb8] sm:$0xff]  ;;  %v111_v43 = vld [vmem:[#allocation8 + $0xa0] sm:$0xff]  ;;  %v631_v56 = vmul.f32 -0.5, %v630_v54 }
  0x52   :  { %699 = vmatpush1.bf16.msra.mxu1 %v698_v25  ;;  %701 = vmatprep.subr.bf16.mxu0 %v700_v30  ;;  %v704_v40 = vpack.c.bf16 %v120_v38, %v112_v37  ;;  %v122_v42 = vld [vmem:[#allocation8 + $0xf8] sm:$0xff]  ;;  %v119_v45 = vld [vmem:[#allocation8 + $0xe0] sm:$0xff]  ;;  %v113_v46 = vld [vmem:[#allocation8 + $0xb0] sm:$0xff] }
  0x53   :  { %709 = vmatprep.subr.bf16.mxu1 %v708_v31  ;;  %v712_v44 = vpack.c.bf16 %v122_v42, %v114_v41  ;;  %v121_v47 = vld [vmem:[#allocation8 + $0xf0] sm:$0xff]  ;;  %v706_v48 = vpack.c.bf16 %v119_v45, %v111_v43  ;;  %v682_v59 = vadd.f32 -0.9189385, %v631_v56  ;;  %v155_v31 = vsub.s32 7, %v969_v3 }
  0x54   :  { %678 = vmatmul.mubr.msk.f32.vlgmr.msra.gmra.mrb[0].mxu0 %vm165_vm0, %v88_v26  ;;  %v714_v49 = vpack.c.bf16 %v121_v47, %v113_v46  ;;  %v90_v50 = vld [vmem:[%s1184_s3] sm:$0xff] }
  0x55   :  { %679 = vmatmul.mubr.msk.f32.vlgmr.msra.gmra.mrb[0].mxu1 %vm165_vm0, %v88_v26  ;;  %703 = vmatpush1.bf16.msra.mxu0 %v702_v35  ;;  %723 = vrcp.f32 %v90_v50  ;;  %v89_v51 = vld [vmem:[#allocation5] sm:$0xff]  ;;  %v633_v62 = vsel %vm165_vm0, %v682_v59, 0.0 }
  0x56   :  { %711 = vmatpush1.bf16.msra.mxu1 %v710_v39  ;;  %705 = vmatprep.subr.bf16.mxu0 %v704_v40  ;;  %725 = vlog2.f32 %v90_v50  ;;  %v636_v52 = vsub.f32 %v88_v26, %v89_v51  ;;  %v123_v5 = vld [vmem:[%s1187_s6] sm:$0xff] }
  0x57   :  { %713 = vmatprep.subr.bf16.mxu1 %v712_v44  ;;  %375 = vmatprep.mubr.f32.mxu0 %v859_v0  ;;  %v128_v9 = vrot.slane %v123_v5, %v127_v4  ;;  %v136_v10 = vrot.slane %v123_v5, %v135_v6  ;;  %v132_v11 = vrot.slane %v123_v5, %v131_v7  ;;  %v76_v4 = vld [vmem:[#allocation3] sm:$0xff] }
  0x58   :  { %446 = vmatprep.mubr.f32.mxu1 %v859_v0  ;;  %634 = vadd.xlane.f32.xlu0 %v633_v62  ;;  %v140_v12 = vrot.slane %v123_v5, %v139_v8  ;;  %v144_v29 = vrot.slane %v123_v5, %v143_v20  ;;  %v152_v30 = vrot.slane %v123_v5, %v151_v21  ;;  %v1030_v8 = vld [vmem:[#allocation3 + $0x10] sm:$0xff]  ;;  %v81_v20 = vunpack.c.h.bf16 %v76_v4 }
  0x59   :  { %707 = vmatpush1.bf16.msra.mxu0 %v706_v48  ;;  %v148_v35 = vrot.slane %v123_v5, %v147_v24  ;;  %v156_v46 = vrot.slane %v123_v5, %v155_v31  ;;  %v77_v5 = vld [vmem:[#allocation3 + $0x8] sm:$0xff] }
  0x5a   :  { %715 = vmatpush1.bf16.msra.mxu1 %v714_v49  ;;  %v83_v24 = vunpack.c.h.bf16 %v77_v5 }
  0x5c   :  { %680 = vmatmul.mubr.msk.f32.vlgmr.msra.gmra.mrb[2].mxu0 %vm165_vm0, %v88_v26 }
  0x5d   :  { %681 = vmatmul.mubr.msk.f32.vlgmr.msra.gmra.mrb[2].mxu1 %vm165_vm0, %v88_v26 }
  0x5f   :  { %v724_v53 = vpop.eup %723 }
  0x60   :  { %v638_v55 = vmul.f32 %v724_v53, %v636_v52  ;;  %v726_v58 = vpop.eup %725 }
  0x61   :  { %v642_v61 = vmul.f32 0.6931472, %v726_v58 }
  0x62   :  { %v639_v57 = vmul.f32 %v638_v55, %v638_v55 }
  0x64   :  { %v640_v60 = vmul.f32 -0.5, %v639_v57 }
  0x66   :  { %v643_v63 = vsub.f32 %v640_v60, %v642_v61 }
  0x68   :  { %v683_v0 = vadd.f32 -0.9189385, %v643_v63 }
  0x6a   :  { %v645_v1 = vsel %vm165_vm0, %v683_v0, 0.0 }
  0x6b   :  { %646 = vadd.xlane.f32.xlu0 %v645_v1 }
 0x127   :  { %v235_v13 = vpop.f32.mrb[0].mxu0 }
 0x128   :  { %v978_v14 = vadd.f32 %v235_v13, %v128_v9  ;;  %v306_v15 = vpop.f32.mrb[0].mxu1  ;;  %v237_v16 = vpop.f32.mrb[1].mxu0 }
 0x129   :  { %v980_v17 = vadd.f32 %v306_v15, %v136_v10  ;;  %v982_v18 = vadd.f32 %v237_v16, %v132_v11  ;;  %v308_v19 = vpop.f32.mrb[1].mxu1  ;;  %v80_v15 = vunpack.c.l.bf16 %v76_v4  ;;  %v82_v16 = vunpack.c.l.bf16 %v77_v5 }
 0x12a   :  { %v987_v22 = vsub.f32 0.0, %v978_v14  ;;  %v989_v23 = vadd.f32 %v308_v19, %v140_v12  ;;  %v1032_v12 = vld [vmem:[#allocation3 + $0x18] sm:$0xff] }
 0x12b   :  { %v993_v25 = vsub.f32 0.0, %v980_v17  ;;  %v997_v27 = vsub.f32 0.0, %v982_v18 }
 0x12c   :  { %v493_v26 = vand.u32 2147483647, %v987_v22  ;;  %v1003_v34 = vsub.f32 0.0, %v989_v23  ;;  %vm477_vm1 = vcmp.ne.f32.partialorder %v987_v22, %v987_v22 }
 0x12d   :  { %v495_v28 = vand.u32 2147483647, %v993_v25  ;;  %v494_v33 = vand.u32 2147483647, %v997_v27  ;;  %vm479_vm3 = vcmp.ne.f32.partialorder %v993_v25, %v993_v25  ;;  %vm478_vm4 = vcmp.ne.f32.partialorder %v997_v27, %v997_v27 }
 0x12e   :  { %v501_v32 = vsub.f32 0.0, %v493_v26  ;;  %v496_v40 = vand.u32 2147483647, %v1003_v34  ;;  %v84_v26 = vunpack.c.l.bf16 %v1030_v8  ;;  %vm480_vm7 = vcmp.ne.f32.partialorder %v1003_v34, %v1003_v34 }
 0x12f   :  { %v503_v36 = vsub.f32 0.0, %v495_v28  ;;  %v377_v37 = vpop.f32.mrb[2].mxu0  ;;  %v502_v39 = vsub.f32 0.0, %v494_v33 }
 0x130   :  { %v509_v38 = vmul.f32 1.442695, %v501_v32  ;;  %v448_v41 = vpop.f32.mrb[2].mxu1  ;;  %v1006_v43 = vadd.f32 %v377_v37, %v144_v29  ;;  %v379_v45 = vpop.f32.mrb[3].mxu0  ;;  %v504_v49 = vsub.f32 0.0, %v496_v40  ;;  %v85_v29 = vunpack.c.h.bf16 %v1030_v8 }
 0x131   :  { %v513_v42 = vmul.f32 1.442695, %v503_v36  ;;  %v1008_v44 = vadd.f32 %v448_v41, %v152_v30  ;;  %v450_v47 = vpop.f32.mrb[3].mxu1  ;;  %v511_v48 = vmul.f32 1.442695, %v502_v39  ;;  %v1010_v50 = vadd.f32 %v379_v45, %v148_v35 }
 0x132   :  { %727 = vpow2.f32 %v509_v38  ;;  %v1013_v51 = vsub.f32 0.0, %v1006_v43  ;;  %v515_v52 = vmul.f32 1.442695, %v504_v49  ;;  %v1023_v57 = vadd.f32 %v450_v47, %v156_v46 }
 0x133   :  { %729 = vpow2.f32 %v513_v42  ;;  %v1016_v53 = vsub.f32 0.0, %v1008_v44  ;;  %v1020_v55 = vsub.f32 0.0, %v1010_v50  ;;  %v86_v30 = vunpack.c.l.bf16 %v1032_v12 }
 0x134   :  { %731 = vpow2.f32 %v511_v48  ;;  %v497_v54 = vand.u32 2147483647, %v1013_v51  ;;  %v1027_v61 = vsub.f32 0.0, %v1023_v57  ;;  %v1041_v36 = vmul.f32 %v978_v14, %v80_v15 }
 0x135   :  { %733 = vpow2.f32 %v515_v52  ;;  %v499_v56 = vand.u32 2147483647, %v1016_v53  ;;  %v498_v59 = vand.u32 2147483647, %v1020_v55  ;;  %v461_v37 = vmax.f32 %v978_v14, 0.0 }
 0x136   :  { %v505_v58 = vsub.f32 0.0, %v497_v54  ;;  %v500_v1 = vand.u32 2147483647, %v1027_v61  ;;  %v1045_v38 = vmul.f32 %v980_v17, %v82_v16  ;;  %v463_v39 = vmax.f32 %v980_v17, 0.0 }
 0x137   :  { %v507_v60 = vsub.f32 0.0, %v499_v56  ;;  %v506_v63 = vsub.f32 0.0, %v498_v59  ;;  %v1049_v40 = vmul.f32 %v982_v18, %v81_v20  ;;  %v462_v41 = vmax.f32 %v982_v18, 0.0 }
 0x138   :  { %v517_v62 = vmul.f32 1.442695, %v505_v58  ;;  %v508_v9 = vsub.f32 0.0, %v500_v1  ;;  %v1054_v46 = vmul.f32 %v989_v23, %v83_v24  ;;  %v464_v56 = vmax.f32 %v989_v23, 0.0 }
 0x139   :  { %v521_v0 = vmul.f32 1.442695, %v507_v60  ;;  %v519_v6 = vmul.f32 1.442695, %v506_v63  ;;  %v1065_v60 = vmul.f32 %v1006_v43, %v84_v26  ;;  %v467_v5 = vmax.f32 %v1008_v44, 0.0 }
 0x13a   :  { %735 = vpow2.f32 %v517_v62  ;;  %v523_v31 = vmul.f32 1.442695, %v508_v9  ;;  %v465_v62 = vmax.f32 %v1006_v43, 0.0  ;;  %vm481_vm12 = vcmp.ne.f32.partialorder %v1013_v51, %v1013_v51 }
 0x13b   :  { %737 = vpow2.f32 %v521_v0  ;;  %vm482_vm13 = vcmp.ne.f32.partialorder %v1020_v55, %v1020_v55  ;;  %vm483_vm14 = vcmp.ne.f32.partialorder %v1016_v53, %v1016_v53  ;;  %v468_v53 = vmax.f32 %v1023_v57, 0.0 }
 0x13c   :  { %v728_v7 = vpop.eup %727  ;;  %739 = vpow2.f32 %v519_v6  ;;  %vm484_vm0 = vcmp.ne.f32.partialorder %v1027_v61, %v1027_v61 }
 0x13d   :  { %v730_v10 = vpop.eup %729  ;;  %v525_v11 = vadd.f32 1.0, %v728_v7  ;;  %v528_v32 = vmul.f32 -0.5, %v728_v7  ;;  %v531_v45 = vand.u32 2147483647, %v728_v7 }
 0x13e   :  { %v1034_v13 = vpop.eup %731  ;;  %v543_v19 = vadd.f32 1.0, %v730_v10  ;;  %v546_v33 = vmul.f32 -0.5, %v730_v10  ;;  %v549_v54 = vand.u32 2147483647, %v730_v10 }
 0x13f   :  { %741 = vlog2.f32 %v525_v11  ;;  %v534_v21 = vadd.f32 1.0, %v1034_v13  ;;  %v734_v28 = vpop.eup %733  ;;  %v537_v42 = vmul.f32 -0.5, %v1034_v13  ;;  %v529_v49 = vadd.f32 1.0, %v528_v32 }
 0x140   :  { %743 = vlog2.f32 %v543_v19  ;;  %v552_v35 = vadd.f32 1.0, %v734_v28  ;;  %v555_v47 = vmul.f32 -0.5, %v734_v28  ;;  %v547_v52 = vadd.f32 1.0, %v546_v33 }
 0x141   :  { %745 = vlog2.f32 %v534_v21  ;;  %v540_v59 = vand.u32 2147483647, %v1034_v13  ;;  %v538_v1 = vadd.f32 1.0, %v537_v42  ;;  %v558_v4 = vand.u32 2147483647, %v734_v28 }
 0x142   :  { %747 = vlog2.f32 %v552_v35  ;;  %vm1073_vm2 = vcmp.lt.f32.partialorder %v531_v45, 0.0004427343  ;;  %v556_v11 = vadd.f32 1.0, %v555_v47  ;;  %v530_v19 = vmul.f32 %v728_v7, %v529_v49 }
 0x143   :  { %749 = vpow2.f32 %v523_v31  ;;  %v548_v20 = vmul.f32 %v730_v10, %v547_v52  ;;  %vm1082_vm5 = vcmp.lt.f32.partialorder %v549_v54, 0.0004427343  ;;  %vm1086_vm6 = vcmp.lt.f32.partialorder %v540_v59, 0.0004427343 }
 0x144   :  { %v1056_v48 = vpop.eup %735  ;;  %v539_v10 = vmul.f32 %v1034_v13, %v538_v1  ;;  %vm1094_vm8 = vcmp.lt.f32.partialorder %v558_v4, 0.0004427343  ;;  %v557_v49 = vmul.f32 %v734_v28, %v556_v11 }
 0x145   :  { %v1059_v58 = vpop.eup %737  ;;  %v561_v63 = vadd.f32 1.0, %v1056_v48  ;;  %v564_v32 = vmul.f32 -0.5, %v1056_v48  ;;  %v567_v13 = vand.u32 2147483647, %v1056_v48 }
 0x146   :  { %v1069_v0 = vpop.eup %739  ;;  %v579_v6 = vadd.f32 1.0, %v1059_v58  ;;  %v582_v42 = vmul.f32 -0.5, %v1059_v58  ;;  %v585_v1 = vand.u32 2147483647, %v1059_v58 }
 0x147   :  { %751 = vlog2.f32 %v561_v63  ;;  %v570_v15 = vadd.f32 1.0, %v1069_v0  ;;  %v573_v52 = vmul.f32 -0.5, %v1069_v0  ;;  %vm1126_vm9 = vcmp.lt.f32.partialorder %v567_v13, 0.0004427343 }
 0x148   :  { %753 = vlog2.f32 %v579_v6  ;;  %v583_v11 = vadd.f32 1.0, %v582_v42  ;;  %vm1136_vm10 = vcmp.lt.f32.partialorder %v585_v1, 0.0004427343 }
 0x149   :  { %v742_v16 = vpop.eup %741  ;;  %755 = vlog2.f32 %v570_v15 }
 0x14a   :  { %v744_v24 = vpop.eup %743  ;;  %v527_v26 = vmul.f32 0.6931472, %v742_v16  ;;  %v565_v16 = vadd.f32 1.0, %v564_v32  ;;  %v584_v27 = vmul.f32 %v1059_v58, %v583_v11 }
 0x14b   :  { %v746_v33 = vpop.eup %745  ;;  %v545_v7 = vmul.f32 0.6931472, %v744_v24  ;;  %v574_v24 = vadd.f32 1.0, %v573_v52  ;;  %v458_v52 = vmul.f32 %v1010_v50, %v85_v29 }
 0x14c   :  { %v533_v45 = vsel %vm1073_vm2, %v530_v19, %v527_v26  ;;  %v536_v47 = vmul.f32 0.6931472, %v746_v33  ;;  %v748_v54 = vpop.eup %747  ;;  %v566_v31 = vmul.f32 %v1056_v48, %v565_v16  ;;  %v466_v33 = vmax.f32 %v1010_v50, 0.0 }
 0x14d   :  { %v597_v59 = vadd.f32 %v533_v45, %v461_v37  ;;  %v551_v63 = vsel %vm1082_vm5, %v548_v20, %v545_v7  ;;  %v750_v4 = vpop.eup %749  ;;  %v554_v9 = vmul.f32 0.6931472, %v748_v54  ;;  %v575_v34 = vmul.f32 %v1069_v0, %v574_v24 }
 0x14e   :  { %v599_v6 = vadd.f32 %v551_v63, %v463_v39  ;;  %v542_v15 = vsel %vm1086_vm6, %v539_v10, %v536_v47  ;;  %v588_v19 = vadd.f32 1.0, %v750_v4  ;;  %v576_v39 = vand.u32 2147483647, %v1069_v0 }
 0x14f   :  { %v605_v28 = vsel %vm477_vm1, %v978_v14, %v597_v59  ;;  %v598_v37 = vadd.f32 %v542_v15, %v462_v41  ;;  %v560_v21 = vsel %vm1094_vm8, %v557_v49, %v554_v9  ;;  %v591_v35 = vmul.f32 -0.5, %v750_v4 }
 0x150   :  { %v613_v20 = vsub.f32 %v1041_v36, %v605_v28  ;;  %v607_v26 = vsel %vm479_vm3, %v980_v17, %v599_v6  ;;  %v600_v22 = vadd.f32 %v560_v21, %v464_v56  ;;  %757 = vlog2.f32 %v588_v19 }
 0x151   :  { %v606_v14 = vsel %vm478_vm4, %v982_v18, %v598_v37  ;;  %v752_v41 = vpop.eup %751  ;;  %v615_v48 = vsub.f32 %v1045_v38, %v607_v26  ;;  %vm577_vm11 = vcmp.lt.f32.partialorder %v576_v39, 0.0004427343  ;;  %v592_v59 = vadd.f32 1.0, %v591_v35 }
 0x152   :  { %v614_v36 = vsub.f32 %v1049_v40, %v606_v14  ;;  %v754_v25 = vpop.eup %753  ;;  %v608_v17 = vsel %vm480_vm7, %v989_v23, %v600_v22  ;;  %v563_v18 = vmul.f32 0.6931472, %v752_v41  ;;  %v594_v51 = vand.u32 2147483647, %v750_v4 }
 0x153   :  { %v756_v40 = vpop.eup %755  ;;  %v581_v10 = vmul.f32 0.6931472, %v754_v25  ;;  %v616_v23 = vsub.f32 %v1054_v46, %v608_v17  ;;  %v87_v6 = vunpack.c.h.bf16 %v1032_v12  ;;  %v593_v15 = vmul.f32 %v750_v4, %v592_v59  ;;  %v635_v12 = vpop.xlane.xlu0 %634 }
 0x154   :  { %v621_v7 = vadd.f32 %v614_v36, %v613_v20  ;;  %v569_v42 = vsel %vm1126_vm9, %v566_v31, %v563_v18  ;;  %v572_v45 = vmul.f32 0.6931472, %v756_v40  ;;  %vm595_vm15 = vcmp.lt.f32.partialorder %v594_v51, 0.0004427343 }
 0x155   :  { %v601_v58 = vadd.f32 %v569_v42, %v465_v62  ;;  %v587_v47 = vsel %vm1136_vm10, %v584_v27, %v581_v10  ;;  %v460_v37 = vmul.f32 %v1023_v57, %v87_v6  ;;  %v662_v19 = vand.u32 127, %v125_v2 }
 0x156   :  { %v622_v49 = vadd.f32 %v621_v7, %v615_v48  ;;  %v578_v38 = vsel %vm577_vm11, %v575_v34, %v572_v45  ;;  %v603_v0 = vadd.f32 %v587_v47, %v467_v5  ;;  %v651_v21 = vstv %s1181_s0 }
 0x157   :  { %v609_v46 = vsel %vm481_vm12, %v1006_v43, %v601_v58  ;;  %v602_v54 = vadd.f32 %v578_v38, %v466_v33  ;;  %v459_v43 = vmul.f32 %v1008_v44, %v86_v30  ;;  %v647_v4 = vpop.xlane.xlu0 %646  ;;  %vm665_vm1 = vcmp.eq.s32.totalorder %v662_v19, 2 }
 0x158   :  { %v623_v62 = vadd.f32 %v622_v49, %v616_v23  ;;  %v617_v63 = vsub.f32 %v1065_v60, %v609_v46  ;;  %v611_v29 = vsel %vm483_vm14, %v1008_v44, %v603_v0  ;;  %v648_v20 = vsub.f32 %v647_v4, %v635_v12 }
 0x159   :  { %v610_v8 = vsel %vm482_vm13, %v1010_v50, %v602_v54  ;;  %v619_v9 = vsub.f32 %v459_v43, %v611_v29  ;;  %vm659_vm2 = vcmp.lt.s32.totalorder %v969_v3, 2  ;;  %vm664_vm3 = vcmp.eq.s32.totalorder %v662_v19, 1 }
 0x15a   :  { %v758_v13 = vpop.eup %757  ;;  %v618_v5 = vsub.f32 %v458_v52, %v610_v8  ;;  %v624_v1 = vadd.f32 %v623_v62, %v617_v63  ;;  %v652_v24 = vmul.f32 %v651_v21, %v648_v20  ;;  %vm663_vm4 = vcmp.eq.s32.totalorder %v662_v19, 0 }
 0x15b   :  { %v590_v55 = vmul.f32 0.6931472, %v758_v13  ;;  %vm669_vm5 = vcmask 31744  }
 0x15c   :  { %v625_v60 = vadd.f32 %v624_v1, %v618_v5 }
 0x15d   :  { %v596_v16 = vsel %vm595_vm15, %v593_v15, %v590_v55 }
 0x15e   :  { %v604_v50 = vadd.f32 %v596_v16, %v468_v53  ;;  %v626_v28 = vadd.f32 %v625_v60, %v619_v9 }
 0x160   :  { %v612_v44 = vsel %vm484_vm0, %v1023_v57, %v604_v50 }
 0x161   :  { %v620_v30 = vsub.f32 %v460_v37, %v612_v44 }
 0x163   :  { %v627_v11 = vadd.f32 %v626_v28, %v620_v30 }
 0x165   :  { %628 = vadd.xlane.f32.xlu1 %v627_v11 }
 0x1f2   :  { %v629_v61 = vpop.xlane.xlu1 %628 }
 0x1f3   :  { %v649_v57 = vsub.f32 %v629_v61, %v648_v20  ;;  %v653_v39 = vsub.f32 %v629_v61, %v652_v24  ;;  %v666_v26 = vsel %vm665_vm1, %v629_v61, %v648_v20 }
 0x1f5   :  { %v660_v14 = vsel %vm659_vm2, %v653_v39, 0.0  ;;  %v667_v22 = vsel %vm664_vm3, %v649_v57, %v666_v26 }
 0x1f6   :  { %v668_v41 = vsel %vm663_vm4, %v660_v14, %v667_v22 }
 0x1f7   :  { %670 = vst.msk [vmem:[%s1188_s7] sm:$0xff] %vm669_vm5, %v668_v41 }
 0x1f8   :  { %675 = vsyncpa [#allocation4], 1 }
 0x1f9   :  { %676 = vsyncpa [#allocation6], 1 }
 0x1fa   :  { %677 = vsyncpa [#allocation9], 1 }

</bundles_post_ra>
